<compile_context>
chip_gen: v7x
topology: tpu7x:2x2x1
jax: 0.10.0
libtpu: 0.0.40
codegen_flags: <defaults>
</compile_context>

<pallas_src>
import jax
import jax.numpy as jnp
from jax.experimental import pallas as pl
from jax.experimental.pallas import tpu as pltpu

LANES = 128      # vreg lane width
SUBLANES = 8     # vreg sublane count


def _round_up(x, m):
    return ((x + m - 1) // m) * m


def embedding_kernel(idx_ref, table_ref, out_ref):
    # idx_ref   : (R, 128)   int32   lane-dense tile of flattened token ids
    # table_ref : (V, D)     float32 full embedding table (VMEM resident)
    # out_ref   : (R*128, D) float32 gathered embeddings for this tile
    R = idx_ref.shape[0]
    V = table_ref.shape[0]
    table = table_ref[...]
    # Hoisted: JAX does not CSE broadcast_in_dim inside the loop.
    iota_v = jax.lax.broadcasted_iota(jnp.int32, (V, LANES), 0)

    def body(r, carry):
        # 128 token ids for this lane group; values stay lane-resident.
        idx_row = idx_ref[pl.ds(r, 1), :]                       # (1, 128)
        # one-hot[v, l] = (v == idx_row[l]) via sublane-broadcast compare.
        onehot = (iota_v == idx_row).astype(table.dtype)        # (V, 128)
        # Contract over V: (V,128)^T @ (V,D) -> (128, D).  Exact (0/1 weights).
        emb = jax.lax.dot_general(
            onehot, table,
            dimension_numbers=(((0,), (0,)), ((), ())),
            preferred_element_type=jnp.float32)
        start = pl.multiple_of(r * LANES, LANES)
        out_ref[pl.ds(start, LANES), :] = emb.astype(out_ref.dtype)
        return carry

    jax.lax.fori_loop(0, R, body, 0)


def naive_embedding(indices, table, *, tm=4096):
    """Pallas equivalent of NaiveEmbedding.forward: table[indices].

    indices : (B, S) int ids in [0, V); out-of-range ids give zero rows.
    table   : (V, D) float32; row 0 (padding_idx) should be zeros.
    returns : (B, S, D) float32
    """
    B, S = indices.shape
    V, D = table.shape
    N = B * S

    # Token tile: multiple of 8*128 so the index block stays sublane-aligned
    # whenever the grid has more than one step; clamp down for small N so we
    # never run more grid steps than needed.
    tm = _round_up(max(tm, LANES), SUBLANES * LANES)
    n_cover = _round_up(N, LANES)
    tm_eff = n_cover if n_cover <= tm else tm
    grid = pl.cdiv(N, tm_eff)
    rows_per_tile = tm_eff // LANES

    # Lane-dense index layout (rows of 128).  Padding the *indices* to a whole
    # number of tiles is cheap (4 B/token); padded ids are 0 and their output
    # rows fall in the masked ragged last block anyway.
    n_idx_pad = grid * tm_eff
    flat_idx = indices.reshape(N).astype(jnp.int32)
    if n_idx_pad != N:
        flat_idx = jnp.pad(flat_idx, (0, n_idx_pad - N))
    idx2d = flat_idx.reshape(n_idx_pad // LANES, LANES)

    itemsize = jnp.dtype(table.dtype).itemsize
    cost = pl.CostEstimate(
        flops=2 * N * V * D,                 # one-hot MXU matmul
        transcendentals=0,
        bytes_accessed=N * 4 + V * D * itemsize + N * D * itemsize,
    )

    out_flat = pl.pallas_call(
        embedding_kernel,
        # Output is (N, D): no host-side pad/slice -- Pallas masks the ragged
        # last block, and (N, D) -> (B, S, D) stays a free bitcast.
        out_shape=jax.ShapeDtypeStruct((N, D), table.dtype),
        grid_spec=pltpu.PrefetchScalarGridSpec(
            num_scalar_prefetch=0,
            grid=(grid,),
            in_specs=[
                pl.BlockSpec((rows_per_tile, LANES), lambda i: (i, 0)),  # ids
                pl.BlockSpec((V, D), lambda i: (0, 0)),   # table, resident
            ],
            out_specs=pl.BlockSpec((tm_eff, D), lambda i: (i, 0)),
        ),
        compiler_params=pltpu.CompilerParams(
            dimension_semantics=("parallel",),
        ),
        cost_estimate=cost,
    )(idx2d, table)

    return out_flat.reshape(B, S, D)


if __name__ == "__main__":
    # args.num_edges = 15 -> vocab V = 16 ; args.edge_dim = 128
    num_edges = 15
    edge_dim = 128
    V = num_edges + 1

    key = jax.random.PRNGKey(0)
    k_tab, k_idx = jax.random.split(key)

    # nn.Embedding default init ~ N(0, 1); padding_idx=0 row is zeroed.
    table = jax.random.normal(k_tab, (V, edge_dim), dtype=jnp.float32)
    table = table.at[0].set(0.0)

    # inputs: (batch=2, seq=8) edge ids, include some padding (0) entries
    batch, seq = 2, 8
    indices = jax.random.randint(k_idx, (batch, seq), 0, V, dtype=jnp.int32)
    indices = indices.at[0, 0].set(0).at[1, -1].set(0)  # exercise padding_idx

    out = naive_embedding(indices, table)
    jax.block_until_ready(out)

    # reference check (plain JAX gather)
    ref = table[indices]
    assert out.shape == (batch, seq, edge_dim)
    assert jnp.allclose(out, ref, atol=1e-6), "mismatch vs reference gather"
    # padding rows must be exactly zero
    assert jnp.all(out[0, 0] == 0.0) and jnp.all(out[1, -1] == 0.0)

    # ragged N, single tile (N=21 -> masked ragged output block)
    idx2 = jax.random.randint(jax.random.PRNGKey(1), (3, 7), 0, V, jnp.int32)
    out2 = naive_embedding(idx2, table)
    jax.block_until_ready(out2)
    assert jnp.allclose(out2, table[idx2], atol=1e-6)

    # ragged N with grid > 1 (tm=1024 -> 2 steps, second output block masked)
    idx3 = jax.random.randint(jax.random.PRNGKey(2), (9, 130), 0, V, jnp.int32)
    out3 = naive_embedding(idx3, table, tm=1024)
    jax.block_until_ready(out3)
    assert jnp.allclose(out3, table[idx3], atol=1e-6)

    print("KERNEL_OK")
</pallas_src>

<mosaic_0001>
module attributes {stable_mosaic.version = 11 : i64} {
  func.func @embedding_kernel(%arg0: i32, %arg1: memref<1x128xi32, #tpu.memory_space<vmem>>, %arg2: memref<16x128xf32, #tpu.memory_space<vmem>>, %arg3: memref<128x128xf32, #tpu.memory_space<vmem>>) attributes {dimension_semantics = [#tpu.dimension_semantics<parallel>], iteration_bounds = array<i64: 1>, scalar_prefetch = 0 : i64, scratch_operands = 0 : i64, tpu.core_type = #tpu.core_type<tc>, window_params = [{transform_indices = @transform_0, window_bounds = array<i64: 1, 128>}, {pipeline_mode = #tpu.pipeline_mode<synchronous>, transform_indices = @transform_1, window_bounds = array<i64: 16, 128>}, {transform_indices = @transform_2, window_bounds = array<i64: 128, 128>}]} {
    %c0 = arith.constant 0 : index
    %c0_0 = arith.constant 0 : index
    %0 = vector.load %arg2[%c0, %c0_0] : memref<16x128xf32, #tpu.memory_space<vmem>>, vector<16x128xf32>
    %1 = tpu.iota {dimensions = array<i32: 0>} : vector<16x128xi32>
    %c0_i32 = arith.constant 0 : i32
    %2 = arith.index_cast %c0_i32 : i32 to index
    %c0_1 = arith.constant 0 : index
    %3 = vector.load %arg1[%2, %c0_1] : memref<1x128xi32, #tpu.memory_space<vmem>>, vector<1x128xi32>
    %4 = vector.broadcast %3 : vector<1x128xi32> to vector<16x128xi32>
    %5 = arith.cmpi eq, %1, %4 : vector<16x128xi32>
    %6 = arith.extui %5 : vector<16x128xi1> to vector<16x128xi32>
    %7 = arith.sitofp %6 : vector<16x128xi32> to vector<16x128xf32>
    %cst = arith.constant dense<0.000000e+00> : vector<128x128xf32>
    %8 = tpu.matmul %7, %0, %cst {dimension_numbers = #tpu.dot_dimension_numbers<[0], [0], [1], [1], [0, 1, 1, 1], [], []>} : vector<16x128xf32>, vector<16x128xf32>, vector<128x128xf32> -> vector<128x128xf32>
    %c128_i32 = arith.constant 128 : i32
    %9 = arith.muli %c0_i32, %c128_i32 : i32
    %10 = tpu.assume_multiple %9, 128 : i32
    %11 = arith.index_cast %10 : i32 to index
    %c0_2 = arith.constant 0 : index
    %12 = vector.load %arg3[%11, %c0_2] : memref<128x128xf32, #tpu.memory_space<vmem>>, vector<128x128xf32>
    tpu.vector_store %arg3[%11, %c0_2], %8 {strides = array<i32>} : memref<128x128xf32, #tpu.memory_space<vmem>>, vector<128x128xf32>,
    %c1_i32 = arith.constant 1 : i32
    return
  }
  func.func @transform_0(%arg0: i32) -> (i32, i32) {
    %c0_i32 = arith.constant 0 : i32
    %c0_i32_0 = arith.constant 0 : i32
    return %arg0, %c0_i32 : i32, i32
  }
  func.func @transform_1(%arg0: i32) -> (i32, i32) {
    %c0_i32 = arith.constant 0 : i32
    %c0_i32_0 = arith.constant 0 : i32
    %c0_i32_1 = arith.constant 0 : i32
    return %c0_i32, %c0_i32_0 : i32, i32
  }
  func.func @transform_2(%arg0: i32) -> (i32, i32) {
    %c0_i32 = arith.constant 0 : i32
    %c0_i32_0 = arith.constant 0 : i32
    return %arg0, %c0_i32 : i32, i32
  }
}

</mosaic_0001>

<bundles_post_ra>
// kernel: tpu_custom_call.1
= control target key start
LH: loop header
LB: loop body
LE: loop exit
PB: predicated region body
PF: predicated region fallthrough
CT: control target
= control target key end

     0   :  { %7 = vsyncpa [#allocation3], 0  ;;  %s549_s0 = inlined_call_operand.hbm [shape: s32[1,128], index: 0, kind: input, shape index: {}]   ;;  %s550_s1 = inlined_call_operand.hbm [shape: f32[16,128], index: 1, kind: input, shape index: {}]   ;;  %s551_s2 = inlined_call_operand.hbm [shape: f32[16,128], index: 2, kind: output, shape index: {}]  }
   0x1   :  { %8 = vsyncpa [#allocation6], 0 }
   0x2   :  { %9 = vsyncpa [#allocation4], 0  ;;  %s463_s9 = smov [#allocation2]   ;;  %s464_s11 = smov [#allocation5]  }
   0x3   :  { %s16_s10 = sshll.u32 %s463_s9, 4  ;;  %s25_s12 = sshll.u32 %s464_s11, 4  ;;  %s17_s10 = int_to_ptr.vmem [resolvable:$true] %s16_s10  ;;  %s484_s12 = int_to_ptr.vmem [resolvable:$true] %s25_s12 }
   0x4   :  { %s391_s15 = scalar_lea.hbm %s549_s0, 16 }
   0x5   :  { %p392_p0 = scmp.ne.s32.totalorder %s549_s0, %s391_s15  ;;  %p395_p1 = scmp.lt.u32.totalorder %s391_s15, %s549_s0 }
   0x7   :  { %p397_p2 = pnand %p395_p1, %p392_p0 }
   0x9   :  { %400 = shalt.err (!%p397_p2)
}
   0xa   :  { %s401_s20 = scalar_lea.vmem %s17_s10, 16  ;;  %s405_s21 = scalar_lea.vmem %s17_s10, 32 }
   0xb   :  { %p402_p3 = scmp.ne.s32.totalorder %s17_s10, %s401_s20  ;;  %p406_p4 = scmp.lt.s32.totalorder %s17_s10, %s17_s10 }
   0xc   :  { %p407_p5 = scmp.lt.s32.totalorder %s405_s21, %s401_s20 }
   0xe   :  { %p408_p6 = por %p407_p5, %p406_p4 }
  0x10   :  { %p409_p7 = pnand %p408_p6, %p402_p3 }
  0x12   :  { %412 = shalt.err (!%p409_p7)
}
  0x13   :  { %19 = dma.hbm_to_vmem [thread:$0]  %s549_s0, 16, %s17_s10, [#allocation3]  }
  0x14   :  { %s413_s26 = scalar_lea.hbm %s550_s1, 256 }
  0x15   :  { %p414_p8 = scmp.ne.s32.totalorder %s550_s1, %s413_s26  ;;  %p417_p9 = scmp.lt.u32.totalorder %s413_s26, %s550_s1 }
  0x17   :  { %p419_p10 = pnand %p417_p9, %p414_p8 }
  0x19   :  { %422 = shalt.err (!%p419_p10)
}
  0x1a   :  { %s423_s3 = scalar_lea.vmem %s484_s12, 256  ;;  %p428_p12 = scmp.lt.s32.totalorder %s484_s12, %s484_s12 }
  0x1b   :  { %p424_p11 = scmp.ne.s32.totalorder %s484_s12, %s423_s3  ;;  %p429_p13 = scmp.lt.s32.totalorder %s423_s3, %s423_s3 }
  0x1d   :  { %p430_p0 = por %p429_p13, %p428_p12 }
  0x1f   :  { %p431_p1 = pnand %p430_p0, %p424_p11 }
  0x21   :  { %434 = shalt.err (!%p431_p1)
}
  0x22   :  { %s465_s0 = smov 128   ;;  %s466_s4 = smov 8  }
  0x23   :  { %31 = dma.hbm_to_vmem [thread:$0]  %s550_s1, 256, %s484_s12, [#allocation6], %s465_s0, %s465_s0, %s466_s4  }
  0x24   :  { %457 = dma.done.wait [#allocation3], 16  }
  0x25   :  { %458 = vsyncadd [#allocation3], 4294967280 }
  0x26   :  { %459 = dma.done.wait [#allocation6], 256  }
  0x27   :  { %460 = vsyncadd [#allocation6], 4294967040  ;;  %v40_v0 = vlaneseq  ;;  %v314_v3 = vld [vmem:[#allocation2] ss:$0 sm:$0xff]  ;;  %v38_v4 = vld [vmem:[#allocation5] sm:$0xff]  ;;  %v467_v6 = vmov 0.0  }
  0x28   :  { %v39_v5 = vld [vmem:[#allocation5 + $0x8] sm:$0xff]  ;;  %vm86_vm2 = vcmask 130048  }
  0x29   :  { %v41_v1 = vshrl.u32 %v40_v0, 7  ;;  %v379_v8 = vpack.c.bf16 %v39_v5, %v38_v4 }
  0x2b   :  { %v42_v2 = vadd.s32 8, %v41_v1  ;;  %vm48_vm0 = vcmp.eq.s32.totalorder %v41_v1, %v314_v3  ;;  %380 = vmatprep.subr.bf16.mxu0 %v379_v8  ;;  %383 = vmatprep.subr.bf16.mxu1 %v379_v8 }
  0x2c   :  { %v315_v7 = vsel %vm48_vm0, 1.0, %v467_v6  ;;  %382 = vmatpush3.bf16.msra.mxu0 %v379_v8  ;;  %384 = vmatpush3.bf16.msra.mxu1 %v379_v8 }
  0x2d   :  { %vm49_vm1 = vcmp.eq.s32.totalorder %v42_v2, %v314_v3  ;;  %54 = vxpose.xlu0.b32.start [1/2] (short) %v315_v7, 128 }
  0x2e   :  { %v316_v9 = vsel %vm49_vm1, 1.0, %v467_v6 }
  0x31   :  { %55 = vxpose.xlu0.b32.end [2/2] (short) %v316_v9, 128 }
  0xad   :  { %v70_v10 = vpop.trf.xlu0 }
  0xae   :  { %355 = vmatprep.mubr.msk.f32.mxu0 %vm86_vm2, %v70_v10 }
  0xb1   :  { %v71_v11 = vpop.trf.xlu0 }
  0xb2   :  { %356 = vmatmul.mubr.msk.f32.vlgmr.msra.gmra.mrb[0].mxu0 %vm86_vm2, %v71_v11 }
  0xb5   :  { %v72_v12 = vpop.trf.xlu0 }
  0xb6   :  { %358 = vmatprep.mubr.msk.f32.mxu0 %vm86_vm2, %v72_v12 }
  0xb9   :  { %v73_v13 = vpop.trf.xlu0 }
  0xba   :  { %359 = vmatmul.mubr.msk.f32.gmra.mrb[2].mxu0 %vm86_vm2, %v73_v13 }
  0xbd   :  { %v74_v14 = vpop.trf.xlu0 }
  0xbe   :  { %361 = vmatprep.mubr.msk.f32.mxu0 %vm86_vm2, %v74_v14 }
  0xc1   :  { %v75_v15 = vpop.trf.xlu0 }
  0xc2   :  { %362 = vmatmul.mubr.msk.f32.gmra.mrb[4].mxu0 %vm86_vm2, %v75_v15 }
  0xc5   :  { %v76_v16 = vpop.trf.xlu0 }
  0xc6   :  { %364 = vmatprep.mubr.msk.f32.mxu0 %vm86_vm2, %v76_v16 }
  0xc9   :  { %v77_v17 = vpop.trf.xlu0 }
  0xca   :  { %365 = vmatmul.mubr.msk.f32.gmra.mrb[6].mxu0 %vm86_vm2, %v77_v17 }
  0xcd   :  { %v78_v18 = vpop.trf.xlu0 }
  0xce   :  { %367 = vmatprep.mubr.msk.f32.mxu1 %vm86_vm2, %v78_v18 }
  0xd1   :  { %v79_v19 = vpop.trf.xlu0 }
  0xd2   :  { %368 = vmatmul.mubr.msk.f32.vlgmr.msra.gmra.mrb[0].mxu1 %vm86_vm2, %v79_v19 }
  0xd5   :  { %v80_v20 = vpop.trf.xlu0 }
  0xd6   :  { %370 = vmatprep.mubr.msk.f32.mxu1 %vm86_vm2, %v80_v20 }
  0xd9   :  { %v81_v21 = vpop.trf.xlu0 }
  0xda   :  { %371 = vmatmul.mubr.msk.f32.gmra.mrb[2].mxu1 %vm86_vm2, %v81_v21 }
  0xdd   :  { %v82_v22 = vpop.trf.xlu0 }
  0xde   :  { %373 = vmatprep.mubr.msk.f32.mxu1 %vm86_vm2, %v82_v22 }
  0xe1   :  { %v83_v23 = vpop.trf.xlu0 }
  0xe2   :  { %374 = vmatmul.mubr.msk.f32.gmra.mrb[4].mxu1 %vm86_vm2, %v83_v23 }
  0xe5   :  { %v84_v24 = vpop.trf.xlu0 }
  0xe6   :  { %376 = vmatprep.mubr.msk.f32.mxu1 %vm86_vm2, %v84_v24 }
  0xe9   :  { %v85_v25 = vpop.trf.xlu0 }
  0xea   :  { %377 = vmatmul.mubr.msk.f32.gmra.mrb[6].mxu1 %vm86_vm2, %v85_v25 }
 0x185   :  { %v357_v26 = vpop.f32.mrb[0].mxu0 }
 0x186   :  { %281 = vst [vmem:[#allocation7 + $0x8] sm:$0xff] %v357_v26  ;;  %v201_v27 = vpop.f32.mrb[1].mxu0 }
 0x187   :  { %280 = vst [vmem:[#allocation7] sm:$0xff] %v201_v27 }
 0x18d   :  { %v360_v28 = vpop.f32.mrb[2].mxu0 }
 0x18e   :  { %283 = vst [vmem:[#allocation7 + $0x18] sm:$0xff] %v360_v28  ;;  %v211_v29 = vpop.f32.mrb[3].mxu0 }
 0x18f   :  { %282 = vst [vmem:[#allocation7 + $0x10] sm:$0xff] %v211_v29 }
 0x195   :  { %v363_v30 = vpop.f32.mrb[4].mxu0 }
 0x196   :  { %285 = vst [vmem:[#allocation7 + $0x28] sm:$0xff] %v363_v30  ;;  %v221_v31 = vpop.f32.mrb[5].mxu0 }
 0x197   :  { %284 = vst [vmem:[#allocation7 + $0x20] sm:$0xff] %v221_v31 }
 0x19d   :  { %v366_v32 = vpop.f32.mrb[6].mxu0 }
 0x19e   :  { %287 = vst [vmem:[#allocation7 + $0x38] sm:$0xff] %v366_v32  ;;  %v231_v33 = vpop.f32.mrb[7].mxu0 }
 0x19f   :  { %286 = vst [vmem:[#allocation7 + $0x30] sm:$0xff] %v231_v33 }
 0x1a5   :  { %v369_v34 = vpop.f32.mrb[0].mxu1 }
 0x1a6   :  { %289 = vst [vmem:[#allocation7 + $0x48] sm:$0xff] %v369_v34  ;;  %v241_v35 = vpop.f32.mrb[1].mxu1 }
 0x1a7   :  { %288 = vst [vmem:[#allocation7 + $0x40] sm:$0xff] %v241_v35 }
 0x1ad   :  { %v372_v36 = vpop.f32.mrb[2].mxu1 }
 0x1ae   :  { %291 = vst [vmem:[#allocation7 + $0x58] sm:$0xff] %v372_v36  ;;  %v251_v37 = vpop.f32.mrb[3].mxu1 }
 0x1af   :  { %290 = vst [vmem:[#allocation7 + $0x50] sm:$0xff] %v251_v37 }
 0x1b5   :  { %v375_v38 = vpop.f32.mrb[4].mxu1 }
 0x1b6   :  { %293 = vst [vmem:[#allocation7 + $0x68] sm:$0xff] %v375_v38  ;;  %v261_v39 = vpop.f32.mrb[5].mxu1 }
 0x1b7   :  { %292 = vst [vmem:[#allocation7 + $0x60] sm:$0xff] %v261_v39 }
 0x1bd   :  { %v378_v40 = vpop.f32.mrb[6].mxu1 }
 0x1be   :  { %295 = vst [vmem:[#allocation7 + $0x78] sm:$0xff] %v378_v40  ;;  %v271_v41 = vpop.f32.mrb[7].mxu1 }
 0x1bf   :  { %294 = vst [vmem:[#allocation7 + $0x70] sm:$0xff] %v271_v41 }
 0x1c0   :  { %300 = vsyncadd [#allocation4], 1792  ;;  %s468_s1 = smov [#allocation7]  }
 0x1c1   :  { %s301_s7 = sshll.u32 %s468_s1, 4  ;;  %s302_s7 = int_to_ptr.vmem [resolvable:$true] %s301_s7 }
 0x1c2   :  { %s435_s8 = scalar_lea.vmem %s302_s7, 256  ;;  %s439_s9 = scalar_lea.vmem %s302_s7, 2048 }
 0x1c3   :  { %p436_p2 = scmp.ne.s32.totalorder %s302_s7, %s435_s8  ;;  %p440_p3 = scmp.lt.s32.totalorder %s302_s7, %s302_s7 }
 0x1c4   :  { %p441_p4 = scmp.lt.s32.totalorder %s439_s9, %s435_s8 }
 0x1c6   :  { %p442_p5 = por %p441_p4, %p440_p3 }
 0x1c8   :  { %p443_p6 = pnand %p442_p5, %p436_p2 }
 0x1ca   :  { %446 = shalt.err (!%p443_p6)
}
 0x1cb   :  { %s447_s12 = scalar_lea.hbm %s551_s2, 256 }
 0x1cc   :  { %p448_p7 = scmp.ne.s32.totalorder %s551_s2, %s447_s12  ;;  %p451_p8 = scmp.lt.u32.totalorder %s447_s12, %s551_s2 }
 0x1ce   :  { %p453_p9 = pnand %p451_p8, %p448_p7 }
 0x1d0   :  { %456 = shalt.err (!%p453_p9)
}
 0x1d1   :  { %307 = dma.vmem_to_hbm [thread:$0]  %s302_s7, 256, %s551_s2, [#allocation4], %s465_s0, %s465_s0, %s466_s4  }
 0x1d2   :  { %461 = dma.done.wait [#allocation4], 2048  }
 0x1d3   :  { %462 = vsyncadd [#allocation4], 4294965248 }
 0x1d4   :  { %311 = vsyncpa [#allocation3], 1 }
 0x1d5   :  { %312 = vsyncpa [#allocation6], 1 }
 0x1d6   :  { %313 = vsyncpa [#allocation4], 1 }

</bundles_post_ra>
